<compile_context>
chip_gen: v5e
topology: v5e:2x2
jax: 0.10.0
libtpu: 0.0.40
codegen_flags: <defaults>
</compile_context>

<pallas_src>
import jax
import jax.numpy as jnp
from jax.experimental import pallas as pl
from jax.experimental.pallas import tpu as pltpu


def _copy_kernel(x_ref, o_ref):
    # Pure element-wise copy of one lane-dense tile (VPU / store slots only).
    o_ref[...] = x_ref[...]


_LANE_CANDIDATES = (8192, 4096, 2048, 1024, 512, 256, 128)
# Max bytes per block: 2 MiB keeps (2 in-buffers + 2 out-buffers) <= 8 MiB,
# well under the smallest scoped-VMEM default (16 MiB on v5e).
_MAX_BLOCK_BYTES = 2 * 1024 * 1024


def _sublane_multiple(dtype) -> int:
    """Row-count multiple giving fully packed vregs for this dtype
    (f32 -> 8, bf16 -> 16, int8/fp8 -> 32)."""
    itemsize = jnp.dtype(dtype).itemsize
    return max(8, 32 // max(1, itemsize))


def _choose_lane_width(total: int, sub: int):
    """Largest lane width (multiple of 128) dividing `total`, preferring one
    that also leaves a sublane-dense (multiple of `sub`) row count."""
    for c in _LANE_CANDIDATES:
        if total % c == 0 and (total // c) % sub == 0:
            return c
    for c in _LANE_CANDIDATES:
        if total % c == 0:
            return c
    return None


def _choose_row_tiling(slab_rows: int, lane: int, dtype_size: int, sub: int):
    """Pick (tile_rows, grid_rows).  Prefer a tile that is a multiple of
    `sub` and evenly divides slab_rows so no block needs masked stores."""
    bytes_per_row = lane * dtype_size
    max_tile_r = max(sub, (_MAX_BLOCK_BYTES // bytes_per_row) // sub * sub)
    if slab_rows <= max_tile_r:
        return slab_rows, 1  # full extent; allowed even if not a multiple of sub
    t = max_tile_r
    while t >= sub:
        if slab_rows % t == 0:
            return t, slab_rows // t
        t -= sub
    # No even divisor found: accept a masked partial last block.
    return max_tile_r, pl.cdiv(slab_rows, max_tile_r)


def flatten_layer(x: jax.Array, num_features: int) -> jax.Array:
    """Pallas equivalent of FlattenLayer.forward: x.view(-1, num_features)."""
    total = x.size
    assert total % num_features == 0, "num_features must divide total elements"
    rows = total // num_features
    out_shape = (rows, num_features)

    dtype_size = jnp.dtype(x.dtype).itemsize
    sub = _sublane_multiple(x.dtype)
    lane = _choose_lane_width(total, sub)
    if lane is None:
        # total not a multiple of 128: flatten is metadata-only anyway, so the
        # zero-cost reshape is both correct and optimal here.
        # TODO(synk): no lane-dense tiling exists for this size; skip the copy kernel.
        return jnp.reshape(x, out_shape)

    slab_rows = total // lane
    tile_r, grid_r = _choose_row_tiling(slab_rows, lane, dtype_size, sub)

    # Glue: row-major reshape to the lane-dense slab (free metadata).
    x_slab = jnp.reshape(x, (slab_rows, lane))

    out_slab = pl.pallas_call(
        _copy_kernel,
        out_shape=jax.ShapeDtypeStruct((slab_rows, lane), x.dtype),
        grid_spec=pltpu.PrefetchScalarGridSpec(
            num_scalar_prefetch=0,
            grid=(grid_r,),
            in_specs=[pl.BlockSpec((tile_r, lane), lambda i: (i, 0))],
            out_specs=pl.BlockSpec((tile_r, lane), lambda i: (i, 0)),
        ),
        compiler_params=pltpu.CompilerParams(
            # "parallel" lets v7x shard the mem-bound copy over both TCs;
            # it is a no-op on single-TC v5e/v6e.
            dimension_semantics=("parallel",),
        ),
        cost_estimate=pl.CostEstimate(
            flops=0,
            transcendentals=0,
            bytes_accessed=2 * total * dtype_size,
        ),
    )(x_slab)

    # Final reshape to the logical (batch, num_features) shape (free metadata).
    return jnp.reshape(out_slab, out_shape)


def flatten_layer_module_forward(x: jax.Array, num_features: int):
    """Mirrors ModuleWrapper.forward: returns (out, kl).  FlattenLayer has no
    kl_loss-bearing children, so kl == 0.0."""
    out = flatten_layer(x, num_features)
    kl = jnp.asarray(0.0, dtype=jnp.float32)
    return out, kl


if __name__ == "__main__":
    key = jax.random.PRNGKey(0)
    # Small NCHW input consistent with a conv feature map going into flatten.
    N, C, H, W = 2, 4, 16, 16
    num_features = C * H * W  # 1024
    x = jax.random.normal(key, (N, C, H, W), dtype=jnp.float32)

    out, kl = flatten_layer_module_forward(x, num_features)
    out = jax.block_until_ready(out)

    # Sanity-check against the reference (pure-JAX reshape == torch .view).
    ref = jnp.reshape(x, (-1, num_features))
    assert out.shape == (N, num_features), out.shape
    assert out.dtype == x.dtype
    assert bool(jnp.array_equal(out, ref))
    assert float(kl) == 0.0

    print("KERNEL_OK")
</pallas_src>

<mosaic_0001>
module attributes {stable_mosaic.version = 11 : i64} {
  func.func @_copy_kernel(%arg0: i32, %arg1: memref<8x256xf32, #tpu.memory_space<vmem>>, %arg2: memref<8x256xf32, #tpu.memory_space<vmem>>) attributes {dimension_semantics = [#tpu.dimension_semantics<parallel>], iteration_bounds = array<i64: 1>, scalar_prefetch = 0 : i64, scratch_operands = 0 : i64, tpu.core_type = #tpu.core_type<tc>, window_params = [{transform_indices = @transform_0, window_bounds = array<i64: 8, 256>}, {transform_indices = @transform_1, window_bounds = array<i64: 8, 256>}]} {
    %c0 = arith.constant 0 : index
    %c0_0 = arith.constant 0 : index
    %0 = vector.load %arg1[%c0, %c0_0] : memref<8x256xf32, #tpu.memory_space<vmem>>, vector<8x256xf32>
    %c0_1 = arith.constant 0 : index
    %c0_2 = arith.constant 0 : index
    %1 = vector.load %arg2[%c0_1, %c0_2] : memref<8x256xf32, #tpu.memory_space<vmem>>, vector<8x256xf32>
    tpu.vector_store %arg2[%c0_1, %c0_2], %0 {strides = array<i32>} : memref<8x256xf32, #tpu.memory_space<vmem>>, vector<8x256xf32>,
    return
  }
  func.func @transform_0(%arg0: i32) -> (i32, i32) {
    %c0_i32 = arith.constant 0 : i32
    %c0_i32_0 = arith.constant 0 : i32
    return %arg0, %c0_i32 : i32, i32
  }
  func.func @transform_1(%arg0: i32) -> (i32, i32) {
    %c0_i32 = arith.constant 0 : i32
    %c0_i32_0 = arith.constant 0 : i32
    return %arg0, %c0_i32 : i32, i32
  }
}

</mosaic_0001>

<bundles_post_ra>
// kernel: tpu_custom_call.1
= control target key start
LH: loop header
LB: loop body
LE: loop exit
PB: predicated region body
PF: predicated region fallthrough
CT: control target
= control target key end

     0   :  { %6 = vsyncpa [#allocation3], 0  ;;  %s116_s0 = inlined_call_operand.hbm [shape: f32[8,256], index: 0, kind: input, shape index: {}]   ;;  %s117_s1 = inlined_call_operand.hbm [shape: f32[8,256], index: 1, kind: output, shape index: {}]  }
   0x1   :  { %7 = vsyncpa [#allocation4], 0  ;;  %s13_s8 = sshll.u32 %s116_s0, 4  ;;  %s98_s9 = smov [#allocation2]   ;;  %s14_s8 = int_to_ptr.hbm [resolvable:$true] %s13_s8 }
   0x2   :  { %s15_s10 = sshll.u32 %s98_s9, 4  ;;  %s16_s10 = int_to_ptr.vmem [resolvable:$true] %s15_s10 }
   0x3   :  { %18 = dma.hbm_to_vmem [thread:$0]  %s14_s8, 256, %s16_s10, [#allocation3]  }
   0x4   :  { %94 = dma.done.wait [#allocation3], 256  }
   0x5   :  { %95 = vsyncadd [#allocation3], 4294967040  ;;  %s99_s11 = smov [#allocation5]   ;;  %s34_s15 = sshll.u32 %s117_s1, 4  ;;  %v23_v0 = vld [vmem:[#allocation2] sm:$0xff]  ;;  %v24_v1 = vld [vmem:[#allocation2 + $0x8] sm:$0xff]  ;;  %s35_s15 = int_to_ptr.hbm [resolvable:$true] %s34_s15 }
   0x6   :  { %s32_s12 = sshll.u32 %s99_s11, 4  ;;  %25 = vst [vmem:[#allocation5] sm:$0xff] %v23_v0  ;;  %s33_s12 = int_to_ptr.vmem [resolvable:$true] %s32_s12 }
   0x7   :  { %26 = vst [vmem:[#allocation5 + $0x8] sm:$0xff] %v24_v1 }
   0x8   :  { %37 = dma.vmem_to_hbm [thread:$0]  %s33_s12, 256, %s35_s15, [#allocation4]  }
   0x9   :  { %96 = dma.done.wait [#allocation4], 256  }
   0xa   :  { %97 = vsyncadd [#allocation4], 4294967040 }
   0xb   :  { %42 = vsyncpa [#allocation3], 1 }
   0xc   :  { %43 = vsyncpa [#allocation4], 1 }

</bundles_post_ra>
